<compile_context>
chip_gen: v7x
topology: tpu7x:2x2x1
jax: 0.10.0
libtpu: 0.0.40
codegen_flags: <defaults>
</compile_context>

<pallas_src>
import jax
import jax.numpy as jnp
from jax.experimental import pallas as pl
from jax.experimental.pallas import tpu as pltpu

N_STATES = 4
N_HIDDEN = 50
N_ACTIONS = 2

LANES = 128                  # lane width == padded hidden width
W1_BLOCK_ROWS = 8            # rows 0-3: w1, row 4: b1, row 5: b2, rows 6-7: zero
ROW_B1 = 4
ROW_B2 = 5
W2_ROW0 = W1_BLOCK_ROWS      # w2 occupies rows 8..135 of the packed buffer
PARAM_ROWS = W1_BLOCK_ROWS + LANES   # 136 rows total

MAX_BLOCK_B = 2048           # batch tile cap (per-block VMEM is tiny now)
SPLIT_B = 128                # above this, force >= 2 blocks (v7x megacore)


def _round_up(n, m):
    return ((n + m - 1) // m) * m


def _choose_tiling(B):
    """Return (block_b, b_pad, num_blocks) for a batch of B rows."""
    b8 = _round_up(B, 8)
    if b8 <= SPLIT_B:
        block = b8                                   # single block: overhead-bound
    else:
        # At least 2 blocks so dimension_semantics=("parallel",) can shard the
        # batch across v7x's two TensorCores; capped for pipeline granularity.
        block = min(MAX_BLOCK_B, _round_up(pl.cdiv(b8, 2), 8))
    b_pad = _round_up(b8, block)
    return block, b_pad, b_pad // block


def _net_kernel(x_ref, p_ref, out_ref):
    # Static, zero-cost views into the packed parameter buffer.
    w1 = p_ref[pl.ds(0, N_STATES), :]        # [4, 128]
    b1 = p_ref[pl.ds(ROW_B1, 1), :]          # [1, 128]  (lanes >= 50 are 0)
    b2 = p_ref[pl.ds(ROW_B2, 1), :]          # [1, 128]  (lanes >= 2 are 0)
    w2 = p_ref[pl.ds(W2_ROW0, LANES), :]     # [128, 128] (rows >= 50 are 0)

    # fc1 + bias + ReLU.  K=4 matmul; padded hidden lanes stay 0 after +b1/relu.
    h = jnp.dot(x_ref[...], w1, preferred_element_type=jnp.float32) + b1
    h = jnp.maximum(h, 0.0)

    # fc2 + bias; only the first N_ACTIONS lanes are meaningful -> narrow store.
    y = jnp.dot(h, w2, preferred_element_type=jnp.float32) + b2
    out_ref[...] = y[:, :N_ACTIONS].astype(out_ref.dtype)


def pack_params(w1, b1, w2, b2):
    """Pack all parameters into one [136, 128] f32 buffer.

    w1: [N_STATES, N_HIDDEN]   (transposed PyTorch fc1.weight)
    b1: [N_HIDDEN]
    w2: [N_HIDDEN, N_ACTIONS]  (transposed PyTorch out.weight)
    b2: [N_ACTIONS]
    """
    buf = jnp.zeros((PARAM_ROWS, LANES), jnp.float32)
    buf = buf.at[:N_STATES, :N_HIDDEN].set(w1)
    buf = buf.at[ROW_B1, :N_HIDDEN].set(b1)
    buf = buf.at[ROW_B2, :N_ACTIONS].set(b2)
    buf = buf.at[W2_ROW0:W2_ROW0 + N_HIDDEN, :N_ACTIONS].set(w2)
    return buf


@jax.jit
def net_forward(x, params):
    """x: [B, N_STATES] f32, params: packed [136, 128] f32 -> [B, N_ACTIONS] f32."""
    B = x.shape[0]
    block_b, b_pad, num_blocks = _choose_tiling(B)

    if b_pad != B:
        x = jnp.pad(x, ((0, b_pad - B), (0, 0)))     # batch-dim pad only (16 B/row)

    cost = pl.CostEstimate(
        flops=2 * b_pad * (N_STATES * LANES + LANES * LANES),
        transcendentals=0,
        bytes_accessed=(b_pad * N_STATES * 4
                        + PARAM_ROWS * LANES * 4
                        + b_pad * N_ACTIONS * 4),
    )

    out = pl.pallas_call(
        _net_kernel,
        out_shape=jax.ShapeDtypeStruct((b_pad, N_ACTIONS), jnp.float32),
        grid=(num_blocks,),
        in_specs=[
            # x: last dim == full array dim (4), so no lane padding required.
            pl.BlockSpec((block_b, N_STATES), lambda i: (i, 0)),
            # Params: constant index_map -> DMA'd once, VMEM-resident.
            pl.BlockSpec((PARAM_ROWS, LANES), lambda i: (0, 0)),
        ],
        # Narrow output block; HBM array is contiguous, only 8 B/row written.
        out_specs=pl.BlockSpec((block_b, N_ACTIONS), lambda i: (i, 0)),
        compiler_params=pltpu.CompilerParams(
            dimension_semantics=("parallel",),
            vmem_limit_bytes=32 * 1024 * 1024,
        ),
        cost_estimate=cost,
    )(x, params)

    if b_pad != B:
        out = out[:B]
    return out


def init_params(key):
    """Matches the PyTorch module: weights ~ Normal(0, 0.1), biases keep the
    nn.Linear default Uniform(-1/sqrt(fan_in), +1/sqrt(fan_in))."""
    k1, k2, k3, k4 = jax.random.split(key, 4)
    w1 = 0.1 * jax.random.normal(k1, (N_STATES, N_HIDDEN), dtype=jnp.float32)
    w2 = 0.1 * jax.random.normal(k2, (N_HIDDEN, N_ACTIONS), dtype=jnp.float32)
    bound1 = 1.0 / jnp.sqrt(jnp.float32(N_STATES))
    bound2 = 1.0 / jnp.sqrt(jnp.float32(N_HIDDEN))
    b1 = jax.random.uniform(k3, (N_HIDDEN,), dtype=jnp.float32,
                            minval=-bound1, maxval=bound1)
    b2 = jax.random.uniform(k4, (N_ACTIONS,), dtype=jnp.float32,
                            minval=-bound2, maxval=bound2)
    return w1, b1, w2, b2


if __name__ == "__main__":
    key = jax.random.PRNGKey(0)
    k_x, k_x2, k_p = jax.random.split(key, 3)

    w1, b1, w2, b2 = init_params(k_p)
    params = pack_params(w1, b1, w2, b2)

    def ref_fn(x):
        return jnp.maximum(x @ w1 + b1, 0.0) @ w2 + b2

    # Small DQN-style batch (single block, no padding, no slicing).
    B = 8
    x = jax.random.normal(k_x, (B, N_STATES), dtype=jnp.float32)
    out = net_forward(x, params)
    jax.block_until_ready(out)
    assert out.shape == (B, N_ACTIONS)
    assert jnp.allclose(out, ref_fn(x), atol=1e-5, rtol=1e-5)

    # Larger batch: exercises the >=2-block / resident-weights / padded path.
    B2 = 1000
    x2 = jax.random.normal(k_x2, (B2, N_STATES), dtype=jnp.float32)
    out2 = net_forward(x2, params)
    jax.block_until_ready(out2)
    assert out2.shape == (B2, N_ACTIONS)
    assert jnp.allclose(out2, ref_fn(x2), atol=1e-4, rtol=1e-4)

    print("KERNEL_OK")
</pallas_src>

<mosaic_0001>
module attributes {stable_mosaic.version = 11 : i64} {
  func.func @_net_kernel(%arg0: i32, %arg1: memref<8x4xf32, #tpu.memory_space<vmem>>, %arg2: memref<136x128xf32, #tpu.memory_space<vmem>>, %arg3: memref<8x2xf32, #tpu.memory_space<vmem>>) attributes {dimension_semantics = [#tpu.dimension_semantics<parallel>], iteration_bounds = array<i64: 1>, scalar_prefetch = 0 : i64, scratch_operands = 0 : i64, tpu.core_type = #tpu.core_type<tc>, window_params = [{transform_indices = @transform_0, window_bounds = array<i64: 8, 4>}, {pipeline_mode = #tpu.pipeline_mode<synchronous>, transform_indices = @transform_1, window_bounds = array<i64: 136, 128>}, {transform_indices = @transform_2, window_bounds = array<i64: 8, 2>}]} {
    %c0 = arith.constant 0 : index
    %c0_0 = arith.constant 0 : index
    %0 = vector.load %arg2[%c0, %c0_0] : memref<136x128xf32, #tpu.memory_space<vmem>>, vector<4x128xf32>
    %c4 = arith.constant 4 : index
    %c0_1 = arith.constant 0 : index
    %1 = vector.load %arg2[%c4, %c0_1] : memref<136x128xf32, #tpu.memory_space<vmem>>, vector<1x128xf32>
    %c5 = arith.constant 5 : index
    %c0_2 = arith.constant 0 : index
    %2 = vector.load %arg2[%c5, %c0_2] : memref<136x128xf32, #tpu.memory_space<vmem>>, vector<1x128xf32>
    %c8 = arith.constant 8 : index
    %c0_3 = arith.constant 0 : index
    %3 = vector.load %arg2[%c8, %c0_3] : memref<136x128xf32, #tpu.memory_space<vmem>>, vector<128x128xf32>
    %c0_4 = arith.constant 0 : index
    %c0_5 = arith.constant 0 : index
    %4 = vector.load %arg1[%c0_4, %c0_5] : memref<8x4xf32, #tpu.memory_space<vmem>>, vector<8x4xf32>
    %cst = arith.constant dense<0.000000e+00> : vector<8x128xf32>
    %5 = tpu.matmul %4, %0, %cst {dimension_numbers = #tpu.dot_dimension_numbers<[1], [0], [0], [1], [0, 0, 1, 1], [], []>} : vector<8x4xf32>, vector<4x128xf32>, vector<8x128xf32> -> vector<8x128xf32>
    %6 = vector.broadcast %1 : vector<1x128xf32> to vector<8x128xf32>
    %7 = arith.addf %5, %6 : vector<8x128xf32>
    %cst_6 = arith.constant 0.000000e+00 : f32
    %8 = vector.broadcast %cst_6 : f32 to vector<8x128xf32>
    %9 = arith.maximumf %7, %8 : vector<8x128xf32>
    %cst_7 = arith.constant dense<0.000000e+00> : vector<8x128xf32>
    %10 = tpu.matmul %9, %3, %cst_7 {dimension_numbers = #tpu.dot_dimension_numbers<[1], [0], [0], [1], [0, 0, 1, 1], [], []>} : vector<8x128xf32>, vector<128x128xf32>, vector<8x128xf32> -> vector<8x128xf32>
    %11 = vector.broadcast %2 : vector<1x128xf32> to vector<8x128xf32>
    %12 = arith.addf %10, %11 : vector<8x128xf32>
    %13 = vector.extract_strided_slice %12 {offsets = [0, 0], sizes = [8, 2], strides = [1, 1]} : vector<8x128xf32> to vector<8x2xf32>
    %c0_8 = arith.constant 0 : index
    %c0_9 = arith.constant 0 : index
    %14 = vector.load %arg3[%c0_8, %c0_9] : memref<8x2xf32, #tpu.memory_space<vmem>>, vector<8x2xf32>
    tpu.vector_store %arg3[%c0_8, %c0_9], %13 {strides = array<i32>} : memref<8x2xf32, #tpu.memory_space<vmem>>, vector<8x2xf32>,
    return
  }
  func.func @transform_0(%arg0: i32) -> (i32, i32) {
    %c0_i32 = arith.constant 0 : i32
    %c0_i32_0 = arith.constant 0 : i32
    return %arg0, %c0_i32 : i32, i32
  }
  func.func @transform_1(%arg0: i32) -> (i32, i32) {
    %c0_i32 = arith.constant 0 : i32
    %c0_i32_0 = arith.constant 0 : i32
    %c0_i32_1 = arith.constant 0 : i32
    return %c0_i32, %c0_i32_0 : i32, i32
  }
  func.func @transform_2(%arg0: i32) -> (i32, i32) {
    %c0_i32 = arith.constant 0 : i32
    %c0_i32_0 = arith.constant 0 : i32
    return %arg0, %c0_i32 : i32, i32
  }
}

</mosaic_0001>

<bundles_post_ra>
// kernel: net_forward.1
= control target key start
LH: loop header
LB: loop body
LE: loop exit
PB: predicated region body
PF: predicated region fallthrough
CT: control target
= control target key end

     0   :  { %7 = vsyncpa [#allocation3], 0  ;;  %s326_s9 = smov [#allocation2]   ;;  %s365_s0 = inlined_call_operand.vmem [shape: f32[8,4], index: 0, kind: input, shape index: {}]   ;;  %s366_s1 = inlined_call_operand.hbm [shape: f32[136,128], index: 1, kind: input, shape index: {}]   ;;  %s367_s2 = inlined_call_operand.vmem [shape: f32[8,2], index: 2, kind: output, shape index: {}]  }
   0x1   :  { %s15_s10 = sshll.u32 %s326_s9, 4  ;;  %s302_s13 = scalar_lea.hbm %s366_s1, 2176  ;;  %s16_s10 = int_to_ptr.vmem [resolvable:$true] %s15_s10 }
   0x2   :  { %p303_p0 = scmp.ne.s32.totalorder %s366_s1, %s302_s13  ;;  %p306_p1 = scmp.lt.u32.totalorder %s302_s13, %s366_s1 }
   0x4   :  { %p308_p2 = pnand %p306_p1, %p303_p0 }
   0x6   :  { %311 = shalt.err (!%p308_p2)
}
   0x7   :  { %s312_s18 = scalar_lea.vmem %s16_s10, 2176  ;;  %p317_p4 = scmp.lt.s32.totalorder %s16_s10, %s16_s10 }
   0x8   :  { %p313_p3 = scmp.ne.s32.totalorder %s16_s10, %s312_s18  ;;  %p318_p5 = scmp.lt.s32.totalorder %s312_s18, %s312_s18 }
   0xa   :  { %p319_p6 = por %p318_p5, %p317_p4 }
   0xc   :  { %p320_p7 = pnand %p319_p6, %p313_p3 }
   0xe   :  { %323 = shalt.err (!%p320_p7)
}
   0xf   :  { %s327_s19 = smov 128   ;;  %s328_s20 = smov 8  }
  0x10   :  { %21 = dma.hbm_to_vmem [thread:$0]  %s366_s1, 2176, %s16_s10, [#allocation3], %s327_s19, %s327_s19, %s328_s20  }
  0x11   :  { %324 = dma.done.wait [#allocation3], 2176  }
  0x12   :  { %325 = vsyncadd [#allocation3], 4294965120  ;;  %v329_v0 = vmov 0.0   ;;  %vm330_vm0 = vmmov 0   ;;  %v331_v1 = vmov 0.0|0.0   ;;  %vm53_vm1 = vcmask 1043456  }
  0x13   :  { %232 = vmatprep.subr.mxu0 %v329_v0  ;;  %234 = vmatprep.mubr.msk.f32.mxu0 %vm330_vm0, %v329_v0  ;;  %vm49_vm2 = vcmask 31744   ;;  %v25_v2 = vld [vmem:[#allocation2] sm:$0xf]  ;;  %v28_v4 = vld [vmem:[#allocation2 + $0x8] sm:$0xff]  ;;  %v29_v5 = vld [vmem:[#allocation2 + $0x10] sm:$0xff]  ;;  %vm202_vm3 = vcmask 15360  }
  0x14   :  { %272 = vmatprep.subr.bf16.mxu1 %v331_v1  ;;  %269 = vmatprep.mubr.msk.f32.mxu1 %vm330_vm0, %v329_v0  ;;  %v44_v3 = vld [vmem:[%s365_s0] sm:$0xff]  ;;  %v30_v6 = vld [vmem:[#allocation2 + $0x18] sm:$0xff]  ;;  %v273_v8 = vpack.c.bf16 %v29_v5, %v28_v4  ;;  %v32_v10 = vld [vmem:[#allocation2 + $0x28] sm:$0xff] }
  0x15   :  { %233 = vmatpush3.msk.msra.mxu0 %vm53_vm1, %v25_v2  ;;  %v31_v7 = vld [vmem:[#allocation2 + $0x20] sm:$0xff]  ;;  %v33_v11 = vld [vmem:[#allocation2 + $0x30] sm:$0xff]  ;;  %v34_v13 = vld [vmem:[#allocation2 + $0x38] sm:$0xff] }
  0x16   :  { %235 = vmatmul.mubr.msk.f32.vlgmr.msra.gmra.mrb[0].mxu0 %vm49_vm2, %v44_v3  ;;  %274 = vmatpush3.bf16.msra.mxu1 %v273_v8  ;;  %v276_v9 = vpack.c.bf16 %v31_v7, %v30_v6  ;;  %v279_v12 = vpack.c.bf16 %v33_v11, %v32_v10  ;;  %v35_v14 = vld [vmem:[#allocation2 + $0x40] sm:$0xff]  ;;  %v36_v16 = vld [vmem:[#allocation2 + $0x48] sm:$0xff]  ;;  %v37_v17 = vld [vmem:[#allocation2 + $0x50] sm:$0xff] }
  0x17   :  { %275 = vmatprep.subr.bf16.mxu1 %v331_v1  ;;  %v282_v15 = vpack.c.bf16 %v35_v14, %v34_v13  ;;  %v285_v18 = vpack.c.bf16 %v37_v17, %v36_v16  ;;  %v38_v19 = vld [vmem:[#allocation2 + $0x58] sm:$0xff]  ;;  %v39_v20 = vld [vmem:[#allocation2 + $0x60] sm:$0xff]  ;;  %v40_v22 = vld [vmem:[#allocation2 + $0x68] sm:$0xff] }
  0x18   :  { %v288_v21 = vpack.c.bf16 %v39_v20, %v38_v19  ;;  %v41_v23 = vld [vmem:[#allocation2 + $0x70] sm:$0xff]  ;;  %v42_v25 = vld [vmem:[#allocation2 + $0x78] sm:$0xff]  ;;  %v43_v26 = vld [vmem:[#allocation2 + $0x80] sm:$0xff] }
  0x19   :  { %v291_v24 = vpack.c.bf16 %v41_v23, %v40_v22  ;;  %v294_v27 = vpack.c.bf16 %v43_v26, %v42_v25  ;;  %v209_v28 = vld [vmem:[#allocation2 + $0x4] ss:$0 sm:$0xff]  ;;  %v212_v33 = vld [vmem:[#allocation2 + $0x5] ss:$0 sm:$0xff] }
  0x1a   :  { %277 = vmatpush3.bf16.msra.mxu1 %v276_v9 }
  0x1b   :  { %278 = vmatprep.subr.bf16.mxu1 %v331_v1 }
  0x1e   :  { %280 = vmatpush3.bf16.msra.mxu1 %v279_v12 }
  0x1f   :  { %281 = vmatprep.subr.bf16.mxu1 %v331_v1 }
  0x22   :  { %283 = vmatpush3.bf16.msra.mxu1 %v282_v15 }
  0x23   :  { %284 = vmatprep.subr.bf16.mxu1 %v331_v1 }
  0x26   :  { %286 = vmatpush3.bf16.msra.mxu1 %v285_v18 }
  0x27   :  { %287 = vmatprep.subr.bf16.mxu1 %v331_v1 }
  0x2a   :  { %289 = vmatpush3.bf16.msra.mxu1 %v288_v21 }
  0x2b   :  { %290 = vmatprep.subr.bf16.mxu1 %v331_v1 }
  0x2e   :  { %292 = vmatpush3.bf16.msra.mxu1 %v291_v24 }
  0x2f   :  { %293 = vmatprep.subr.bf16.mxu1 %v331_v1 }
  0x32   :  { %295 = vmatpush3.bf16.msra.mxu1 %v294_v27 }
  0xe9   :  { %v123_v29 = vpop.f32.mrb[0].mxu0 }
  0xea   :  { %v124_v30 = vadd.f32 %v209_v28, %v123_v29  ;;  %v236_v31 = vpop.f32.mrb[1].mxu0 }
  0xec   :  { %v127_v32 = vmax.f32 %v124_v30, 0.0 }
  0xee   :  { %270 = vmatmul.mubr.f32.vlgmr.msra.gmra.mrb[0].mxu1 %v127_v32 }
 0x1c1   :  { %v198_v34 = vpop.f32.mrb[0].mxu1 }
 0x1c2   :  { %v199_v35 = vadd.f32 %v212_v33, %v198_v34  ;;  %v271_v36 = vpop.f32.mrb[1].mxu1 }
 0x1c4   :  { %203 = vst.msk [vmem:[%s367_s2] sm:$0xff] %vm202_vm3, %v199_v35 }
 0x1c5   :  { %208 = vsyncpa [#allocation3], 1 }

</bundles_post_ra>
